<compile_context>
chip_gen: v5e
topology: v5e:2x2
jax: 0.10.0
libtpu: 0.0.40
codegen_flags: <defaults>
</compile_context>

<pallas_src>
import jax
import jax.numpy as jnp
from jax.experimental import pallas as pl
from jax.experimental.pallas import tpu as pltpu


def _round_up(x, m):
    return (x + m - 1) // m * m


def _iknet_kernel(x_ref,
                  w1_ref, b1_ref,
                  w2_ref, b2_ref,
                  w3_ref, b3_ref,
                  w4_ref, b4_ref,
                  o_ref):
    def mlp(xs):
        # bf16 operands on the MXU, f32 accumulation; bias/ReLU kept in f32
        # (safe on v5e's VPU, full-rate bf16 MXU on v6e/v7x).
        h = jnp.dot(xs.astype(jnp.bfloat16), w1_ref[...],
                    preferred_element_type=jnp.float32)
        h = jnp.maximum(h + b1_ref[...], 0.0)
        h = jnp.dot(h.astype(jnp.bfloat16), w2_ref[...],
                    preferred_element_type=jnp.float32)
        h = jnp.maximum(h + b2_ref[...], 0.0)
        h = jnp.dot(h.astype(jnp.bfloat16), w3_ref[...],
                    preferred_element_type=jnp.float32)
        h = jnp.maximum(h + b3_ref[...], 0.0)
        h = jnp.dot(h.astype(jnp.bfloat16), w4_ref[...],
                    preferred_element_type=jnp.float32)
        return (h + b4_ref[...]).astype(o_ref.dtype)

    m = x_ref.shape[0]
    if m >= 16 and m % 16 == 0:
        # Two independent M sub-tiles: the strict dot->bias->ReLU->cast chain
        # of one half can overlap the MXU work of the other half, filling
        # result-FIFO drain bubbles. Halves are sublane-aligned (m % 16 == 0).
        half = m // 2
        o_ref[:half, :] = mlp(x_ref[:half, :])
        o_ref[half:, :] = mlp(x_ref[half:, :])
    else:
        o_ref[...] = mlp(x_ref[...])


def prepare_iknet_params(params):
    """One-time cast/pad of f32 (in, out) weights and (1, out) biases into the
    kernel layout. Padded rows/cols are ZEROS -- that is what guarantees the
    padded input columns and padded output lanes contribute exactly nothing.
    Call once, reuse across iknet_forward calls."""
    in_dim = params["w1"].shape[0]
    out_dim = params["w4"].shape[1]
    in_p = _round_up(in_dim, 8)
    out_p = _round_up(out_dim, 8)

    def pad_to(a, rows, cols, dtype):
        buf = jnp.zeros((rows, cols), dtype)
        return buf.at[:a.shape[0], :a.shape[1]].set(a.astype(dtype))

    return {
        "w1": pad_to(params["w1"], in_p, 128, jnp.bfloat16),
        "b1": params["b1"].astype(jnp.float32),
        "w2": params["w2"].astype(jnp.bfloat16),
        "b2": params["b2"].astype(jnp.float32),
        "w3": params["w3"].astype(jnp.bfloat16),
        "b3": params["b3"].astype(jnp.float32),
        "w4": pad_to(params["w4"], 128, out_p, jnp.bfloat16),
        "b4": pad_to(params["b4"], 1, out_p, jnp.float32),
    }


def iknet_forward(x, prepped, out_dim, *, block_m=1024):
    """x: (B, input_size) f32. prepped: output of prepare_iknet_params.
    out_dim: true output feature count (w4's unpadded column count)."""
    B, in_dim = x.shape
    in_p = prepped["w1"].shape[0]
    out_p = prepped["w4"].shape[1]
    assert in_p == _round_up(in_dim, 8), "prepared params do not match input width"

    # block_m: cap so grid_m >= ~4 (keeps both v7x TensorCores busy and lets
    # the x/out DMA pipeline hide behind compute); multiple of 16 so the
    # in-kernel halves are sublane-aligned; 1024 default for large batches.
    cap = _round_up(pl.cdiv(B, 4), 16)
    block_m = max(16, _round_up(min(block_m, cap), 16))
    grid_m = pl.cdiv(B, block_m)
    b_pad = grid_m * block_m

    # Only pad what is strictly needed (batch remainder, feature width -> 8).
    if b_pad != B or in_p != in_dim:
        xp = jnp.pad(x, ((0, b_pad - B), (0, in_p - in_dim)))
    else:
        xp = x

    w1, b1 = prepped["w1"], prepped["b1"]
    w2, b2 = prepped["w2"], prepped["b2"]
    w3, b3 = prepped["w3"], prepped["b3"]
    w4, b4 = prepped["w4"], prepped["b4"]

    # Constant-index full-array blocks: weights/biases stay resident in VMEM.
    def rep(shape):
        return pl.BlockSpec(shape, lambda i, s=shape: (0,) * len(s))

    flops = 2 * b_pad * (in_p * 128 + 128 * 256 + 256 * 128 + 128 * out_p)
    bytes_accessed = (
        xp.size * 4
        + (w1.size + w2.size + w3.size + w4.size) * 2
        + (b1.size + b2.size + b3.size + b4.size) * 4
        + b_pad * out_p * 4)
    cost = pl.CostEstimate(flops=flops, transcendentals=0,
                           bytes_accessed=bytes_accessed)

    out = pl.pallas_call(
        _iknet_kernel,
        out_shape=jax.ShapeDtypeStruct((b_pad, out_p), jnp.float32),
        grid_spec=pltpu.PrefetchScalarGridSpec(
            num_scalar_prefetch=0,
            grid=(grid_m,),
            in_specs=[
                pl.BlockSpec((block_m, in_p), lambda i: (i, 0)),
                rep(w1.shape), rep(b1.shape),
                rep(w2.shape), rep(b2.shape),
                rep(w3.shape), rep(b3.shape),
                rep(w4.shape), rep(b4.shape),
            ],
            out_specs=pl.BlockSpec((block_m, out_p), lambda i: (i, 0)),
        ),
        compiler_params=pltpu.CompilerParams(
            dimension_semantics=("parallel",)),
        cost_estimate=cost,
    )(xp, w1, b1, w2, b2, w3, b3, w4, b4)

    # Drop batch / output-feature padding.
    if b_pad != B or out_p != out_dim:
        out = out[:B, :out_dim]
    return out


def init_iknet_params(key, input_size, output_size):
    """Matches nn.Linear init U(-1/sqrt(fan_in), 1/sqrt(fan_in)).
    Weights stored pre-transposed as (in, out); biases as (1, out). f32."""
    dims = [(input_size, 128), (128, 256), (256, 128), (128, output_size)]
    params = {}
    for idx, (fan_in, fan_out) in enumerate(dims, start=1):
        key, kw, kb = jax.random.split(key, 3)
        bound = 1.0 / (fan_in ** 0.5)
        params[f"w{idx}"] = jax.random.uniform(
            kw, (fan_in, fan_out), jnp.float32, -bound, bound)
        params[f"b{idx}"] = jax.random.uniform(
            kb, (1, fan_out), jnp.float32, -bound, bound)
    return params


def iknet_reference_bf16(x, params):
    """f32-accumulating reference that mirrors the kernel's bf16 operand casts."""
    bf = lambda a: a.astype(jnp.bfloat16)
    h = jnp.dot(bf(x), bf(params["w1"]), preferred_element_type=jnp.float32)
    h = jnp.maximum(h + params["b1"], 0.0)
    h = jnp.dot(bf(h), bf(params["w2"]), preferred_element_type=jnp.float32)
    h = jnp.maximum(h + params["b2"], 0.0)
    h = jnp.dot(bf(h), bf(params["w3"]), preferred_element_type=jnp.float32)
    h = jnp.maximum(h + params["b3"], 0.0)
    h = jnp.dot(bf(h), bf(params["w4"]), preferred_element_type=jnp.float32)
    return h + params["b4"]


if __name__ == "__main__":
    # IK problem: 6-DoF end-effector pose in, 7 joint angles out.
    input_size, output_size = 6, 7
    batch = 256

    key = jax.random.PRNGKey(0)
    kx, kp = jax.random.split(key)
    x = jax.random.normal(kx, (batch, input_size), jnp.float32)
    params = init_iknet_params(kp, input_size, output_size)

    # One-time weight/bias cast + pad (hoisted out of the per-call path).
    prepped = prepare_iknet_params(params)
    prepped = jax.tree_util.tree_map(jax.block_until_ready, prepped)

    # B=256 -> block_m capped to 64, grid_m=4: both v7x TensorCores get work.
    out = iknet_forward(x, prepped, output_size)
    out = jax.block_until_ready(out)

    ref = iknet_reference_bf16(x, params)
    assert out.shape == (batch, output_size)
    assert jnp.allclose(out, ref, atol=5e-3, rtol=5e-3), "mismatch vs reference"
    print("KERNEL_OK")
</pallas_src>

<mosaic_0001>
module attributes {stable_mosaic.version = 11 : i64} {
  func.func @_iknet_kernel(%arg0: i32, %arg1: memref<64x8xf32, #tpu.memory_space<vmem>>, %arg2: memref<8x128xbf16, #tpu.memory_space<vmem>>, %arg3: memref<1x128xf32, #tpu.memory_space<vmem>>, %arg4: memref<128x256xbf16, #tpu.memory_space<vmem>>, %arg5: memref<1x256xf32, #tpu.memory_space<vmem>>, %arg6: memref<256x128xbf16, #tpu.memory_space<vmem>>, %arg7: memref<1x128xf32, #tpu.memory_space<vmem>>, %arg8: memref<128x8xbf16, #tpu.memory_space<vmem>>, %arg9: memref<1x8xf32, #tpu.memory_space<vmem>>, %arg10: memref<64x8xf32, #tpu.memory_space<vmem>>) attributes {dimension_semantics = [#tpu.dimension_semantics<parallel>], iteration_bounds = array<i64: 4>, scalar_prefetch = 0 : i64, scratch_operands = 0 : i64, tpu.core_type = #tpu.core_type<tc>, window_params = [{transform_indices = @transform_0, window_bounds = array<i64: 64, 8>}, {pipeline_mode = #tpu.pipeline_mode<synchronous>, transform_indices = @transform_1, window_bounds = array<i64: 8, 128>}, {pipeline_mode = #tpu.pipeline_mode<synchronous>, transform_indices = @transform_2, window_bounds = array<i64: 1, 128>}, {pipeline_mode = #tpu.pipeline_mode<synchronous>, transform_indices = @transform_3, window_bounds = array<i64: 128, 256>}, {pipeline_mode = #tpu.pipeline_mode<synchronous>, transform_indices = @transform_4, window_bounds = array<i64: 1, 256>}, {pipeline_mode = #tpu.pipeline_mode<synchronous>, transform_indices = @transform_5, window_bounds = array<i64: 256, 128>}, {pipeline_mode = #tpu.pipeline_mode<synchronous>, transform_indices = @transform_6, window_bounds = array<i64: 1, 128>}, {pipeline_mode = #tpu.pipeline_mode<synchronous>, transform_indices = @transform_7, window_bounds = array<i64: 128, 8>}, {pipeline_mode = #tpu.pipeline_mode<synchronous>, transform_indices = @transform_8, window_bounds = array<i64: 1, 8>}, {transform_indices = @transform_9, window_bounds = array<i64: 64, 8>}]} {
    %c0 = arith.constant 0 : index
    %c0_0 = arith.constant 0 : index
    %0 = vector.load %arg1[%c0, %c0_0] : memref<64x8xf32, #tpu.memory_space<vmem>>, vector<32x8xf32>
    %1 = arith.truncf %0 : vector<32x8xf32> to vector<32x8xbf16>
    %c0_1 = arith.constant 0 : index
    %c0_2 = arith.constant 0 : index
    %2 = vector.load %arg2[%c0_1, %c0_2] : memref<8x128xbf16, #tpu.memory_space<vmem>>, vector<8x128xbf16>
    %cst = arith.constant dense<0.000000e+00> : vector<32x128xf32>
    %3 = tpu.matmul %1, %2, %cst {dimension_numbers = #tpu.dot_dimension_numbers<[1], [0], [0], [1], [0, 0, 1, 1], [], []>} : vector<32x8xbf16>, vector<8x128xbf16>, vector<32x128xf32> -> vector<32x128xf32>
    %c0_3 = arith.constant 0 : index
    %c0_4 = arith.constant 0 : index
    %4 = vector.load %arg3[%c0_3, %c0_4] : memref<1x128xf32, #tpu.memory_space<vmem>>, vector<1x128xf32>
    %5 = vector.broadcast %4 : vector<1x128xf32> to vector<32x128xf32>
    %6 = arith.addf %3, %5 : vector<32x128xf32>
    %cst_5 = arith.constant 0.000000e+00 : f32
    %7 = vector.broadcast %cst_5 : f32 to vector<32x128xf32>
    %8 = arith.maximumf %6, %7 : vector<32x128xf32>
    %9 = arith.truncf %8 : vector<32x128xf32> to vector<32x128xbf16>
    %c0_6 = arith.constant 0 : index
    %c0_7 = arith.constant 0 : index
    %10 = vector.load %arg4[%c0_6, %c0_7] : memref<128x256xbf16, #tpu.memory_space<vmem>>, vector<128x256xbf16>
    %cst_8 = arith.constant dense<0.000000e+00> : vector<32x256xf32>
    %11 = tpu.matmul %9, %10, %cst_8 {dimension_numbers = #tpu.dot_dimension_numbers<[1], [0], [0], [1], [0, 0, 1, 1], [], []>} : vector<32x128xbf16>, vector<128x256xbf16>, vector<32x256xf32> -> vector<32x256xf32>
    %c0_9 = arith.constant 0 : index
    %c0_10 = arith.constant 0 : index
    %12 = vector.load %arg5[%c0_9, %c0_10] : memref<1x256xf32, #tpu.memory_space<vmem>>, vector<1x256xf32>
    %13 = vector.broadcast %12 : vector<1x256xf32> to vector<32x256xf32>
    %14 = arith.addf %11, %13 : vector<32x256xf32>
    %cst_11 = arith.constant 0.000000e+00 : f32
    %15 = vector.broadcast %cst_11 : f32 to vector<32x256xf32>
    %16 = arith.maximumf %14, %15 : vector<32x256xf32>
    %17 = arith.truncf %16 : vector<32x256xf32> to vector<32x256xbf16>
    %c0_12 = arith.constant 0 : index
    %c0_13 = arith.constant 0 : index
    %18 = vector.load %arg6[%c0_12, %c0_13] : memref<256x128xbf16, #tpu.memory_space<vmem>>, vector<256x128xbf16>
    %cst_14 = arith.constant dense<0.000000e+00> : vector<32x128xf32>
    %19 = tpu.matmul %17, %18, %cst_14 {dimension_numbers = #tpu.dot_dimension_numbers<[1], [0], [0], [1], [0, 0, 1, 1], [], []>} : vector<32x256xbf16>, vector<256x128xbf16>, vector<32x128xf32> -> vector<32x128xf32>
    %c0_15 = arith.constant 0 : index
    %c0_16 = arith.constant 0 : index
    %20 = vector.load %arg7[%c0_15, %c0_16] : memref<1x128xf32, #tpu.memory_space<vmem>>, vector<1x128xf32>
    %21 = vector.broadcast %20 : vector<1x128xf32> to vector<32x128xf32>
    %22 = arith.addf %19, %21 : vector<32x128xf32>
    %cst_17 = arith.constant 0.000000e+00 : f32
    %23 = vector.broadcast %cst_17 : f32 to vector<32x128xf32>
    %24 = arith.maximumf %22, %23 : vector<32x128xf32>
    %25 = arith.truncf %24 : vector<32x128xf32> to vector<32x128xbf16>
    %c0_18 = arith.constant 0 : index
    %c0_19 = arith.constant 0 : index
    %26 = vector.load %arg8[%c0_18, %c0_19] : memref<128x8xbf16, #tpu.memory_space<vmem>>, vector<128x8xbf16>
    %cst_20 = arith.constant dense<0.000000e+00> : vector<32x8xf32>
    %27 = tpu.matmul %25, %26, %cst_20 {dimension_numbers = #tpu.dot_dimension_numbers<[1], [0], [0], [1], [0, 0, 1, 1], [], []>} : vector<32x128xbf16>, vector<128x8xbf16>, vector<32x8xf32> -> vector<32x8xf32>
    %c0_21 = arith.constant 0 : index
    %c0_22 = arith.constant 0 : index
    %28 = vector.load %arg9[%c0_21, %c0_22] : memref<1x8xf32, #tpu.memory_space<vmem>>, vector<1x8xf32>
    %29 = vector.broadcast %28 : vector<1x8xf32> to vector<32x8xf32>
    %30 = arith.addf %27, %29 : vector<32x8xf32>
    %c0_23 = arith.constant 0 : index
    %c0_24 = arith.constant 0 : index
    %31 = vector.load %arg10[%c0_23, %c0_24] : memref<64x8xf32, #tpu.memory_space<vmem>>, vector<32x8xf32>
    tpu.vector_store %arg10[%c0_23, %c0_24], %30 {strides = array<i32>} : memref<64x8xf32, #tpu.memory_space<vmem>>, vector<32x8xf32>,
    %c32 = arith.constant 32 : index
    %c0_25 = arith.constant 0 : index
    %32 = vector.load %arg1[%c32, %c0_25] : memref<64x8xf32, #tpu.memory_space<vmem>>, vector<32x8xf32>
    %33 = arith.truncf %32 : vector<32x8xf32> to vector<32x8xbf16>
    %c0_26 = arith.constant 0 : index
    %c0_27 = arith.constant 0 : index
    %34 = vector.load %arg2[%c0_26, %c0_27] : memref<8x128xbf16, #tpu.memory_space<vmem>>, vector<8x128xbf16>
    %cst_28 = arith.constant dense<0.000000e+00> : vector<32x128xf32>
    %35 = tpu.matmul %33, %34, %cst_28 {dimension_numbers = #tpu.dot_dimension_numbers<[1], [0], [0], [1], [0, 0, 1, 1], [], []>} : vector<32x8xbf16>, vector<8x128xbf16>, vector<32x128xf32> -> vector<32x128xf32>
    %c0_29 = arith.constant 0 : index
    %c0_30 = arith.constant 0 : index
    %36 = vector.load %arg3[%c0_29, %c0_30] : memref<1x128xf32, #tpu.memory_space<vmem>>, vector<1x128xf32>
    %37 = vector.broadcast %36 : vector<1x128xf32> to vector<32x128xf32>
    %38 = arith.addf %35, %37 : vector<32x128xf32>
    %cst_31 = arith.constant 0.000000e+00 : f32
    %39 = vector.broadcast %cst_31 : f32 to vector<32x128xf32>
    %40 = arith.maximumf %38, %39 : vector<32x128xf32>
    %41 = arith.truncf %40 : vector<32x128xf32> to vector<32x128xbf16>
    %c0_32 = arith.constant 0 : index
    %c0_33 = arith.constant 0 : index
    %42 = vector.load %arg4[%c0_32, %c0_33] : memref<128x256xbf16, #tpu.memory_space<vmem>>, vector<128x256xbf16>
    %cst_34 = arith.constant dense<0.000000e+00> : vector<32x256xf32>
    %43 = tpu.matmul %41, %42, %cst_34 {dimension_numbers = #tpu.dot_dimension_numbers<[1], [0], [0], [1], [0, 0, 1, 1], [], []>} : vector<32x128xbf16>, vector<128x256xbf16>, vector<32x256xf32> -> vector<32x256xf32>
    %c0_35 = arith.constant 0 : index
    %c0_36 = arith.constant 0 : index
    %44 = vector.load %arg5[%c0_35, %c0_36] : memref<1x256xf32, #tpu.memory_space<vmem>>, vector<1x256xf32>
    %45 = vector.broadcast %44 : vector<1x256xf32> to vector<32x256xf32>
    %46 = arith.addf %43, %45 : vector<32x256xf32>
    %cst_37 = arith.constant 0.000000e+00 : f32
    %47 = vector.broadcast %cst_37 : f32 to vector<32x256xf32>
    %48 = arith.maximumf %46, %47 : vector<32x256xf32>
    %49 = arith.truncf %48 : vector<32x256xf32> to vector<32x256xbf16>
    %c0_38 = arith.constant 0 : index
    %c0_39 = arith.constant 0 : index
    %50 = vector.load %arg6[%c0_38, %c0_39] : memref<256x128xbf16, #tpu.memory_space<vmem>>, vector<256x128xbf16>
    %cst_40 = arith.constant dense<0.000000e+00> : vector<32x128xf32>
    %51 = tpu.matmul %49, %50, %cst_40 {dimension_numbers = #tpu.dot_dimension_numbers<[1], [0], [0], [1], [0, 0, 1, 1], [], []>} : vector<32x256xbf16>, vector<256x128xbf16>, vector<32x128xf32> -> vector<32x128xf32>
    %c0_41 = arith.constant 0 : index
    %c0_42 = arith.constant 0 : index
    %52 = vector.load %arg7[%c0_41, %c0_42] : memref<1x128xf32, #tpu.memory_space<vmem>>, vector<1x128xf32>
    %53 = vector.broadcast %52 : vector<1x128xf32> to vector<32x128xf32>
    %54 = arith.addf %51, %53 : vector<32x128xf32>
    %cst_43 = arith.constant 0.000000e+00 : f32
    %55 = vector.broadcast %cst_43 : f32 to vector<32x128xf32>
    %56 = arith.maximumf %54, %55 : vector<32x128xf32>
    %57 = arith.truncf %56 : vector<32x128xf32> to vector<32x128xbf16>
    %c0_44 = arith.constant 0 : index
    %c0_45 = arith.constant 0 : index
    %58 = vector.load %arg8[%c0_44, %c0_45] : memref<128x8xbf16, #tpu.memory_space<vmem>>, vector<128x8xbf16>
    %cst_46 = arith.constant dense<0.000000e+00> : vector<32x8xf32>
    %59 = tpu.matmul %57, %58, %cst_46 {dimension_numbers = #tpu.dot_dimension_numbers<[1], [0], [0], [1], [0, 0, 1, 1], [], []>} : vector<32x128xbf16>, vector<128x8xbf16>, vector<32x8xf32> -> vector<32x8xf32>
    %c0_47 = arith.constant 0 : index
    %c0_48 = arith.constant 0 : index
    %60 = vector.load %arg9[%c0_47, %c0_48] : memref<1x8xf32, #tpu.memory_space<vmem>>, vector<1x8xf32>
    %61 = vector.broadcast %60 : vector<1x8xf32> to vector<32x8xf32>
    %62 = arith.addf %59, %61 : vector<32x8xf32>
    %c32_49 = arith.constant 32 : index
    %c0_50 = arith.constant 0 : index
    %63 = vector.load %arg10[%c32_49, %c0_50] : memref<64x8xf32, #tpu.memory_space<vmem>>, vector<32x8xf32>
    tpu.vector_store %arg10[%c32_49, %c0_50], %62 {strides = array<i32>} : memref<64x8xf32, #tpu.memory_space<vmem>>, vector<32x8xf32>,
    return
  }
  func.func @transform_0(%arg0: i32) -> (i32, i32) {
    %c0_i32 = arith.constant 0 : i32
    %c0_i32_0 = arith.constant 0 : i32
    return %arg0, %c0_i32 : i32, i32
  }
  func.func @transform_1(%arg0: i32) -> (i32, i32) {
    %c0_i32 = arith.constant 0 : i32
    %c0_i32_0 = arith.constant 0 : i32
    %c0_i32_1 = arith.constant 0 : i32
    return %c0_i32, %c0_i32_0 : i32, i32
  }
  func.func @transform_2(%arg0: i32) -> (i32, i32) {
    %c0_i32 = arith.constant 0 : i32
    %c0_i32_0 = arith.constant 0 : i32
    %c0_i32_1 = arith.constant 0 : i32
    return %c0_i32, %c0_i32_0 : i32, i32
  }
  func.func @transform_3(%arg0: i32) -> (i32, i32) {
    %c0_i32 = arith.constant 0 : i32
    %c0_i32_0 = arith.constant 0 : i32
    %c0_i32_1 = arith.constant 0 : i32
    return %c0_i32, %c0_i32_0 : i32, i32
  }
  func.func @transform_4(%arg0: i32) -> (i32, i32) {
    %c0_i32 = arith.constant 0 : i32
    %c0_i32_0 = arith.constant 0 : i32
    %c0_i32_1 = arith.constant 0 : i32
    return %c0_i32, %c0_i32_0 : i32, i32
  }
  func.func @transform_5(%arg0: i32) -> (i32, i32) {
    %c0_i32 = arith.constant 0 : i32
    %c0_i32_0 = arith.constant 0 : i32
    %c0_i32_1 = arith.constant 0 : i32
    return %c0_i32, %c0_i32_0 : i32, i32
  }
  func.func @transform_6(%arg0: i32) -> (i32, i32) {
    %c0_i32 = arith.constant 0 : i32
    %c0_i32_0 = arith.constant 0 : i32
    %c0_i32_1 = arith.constant 0 : i32
    return %c0_i32, %c0_i32_0 : i32, i32
  }
  func.func @transform_7(%arg0: i32) -> (i32, i32) {
    %c0_i32 = arith.constant 0 : i32
    %c0_i32_0 = arith.constant 0 : i32
    %c0_i32_1 = arith.constant 0 : i32
    return %c0_i32, %c0_i32_0 : i32, i32
  }
  func.func @transform_8(%arg0: i32) -> (i32, i32) {
    %c0_i32 = arith.constant 0 : i32
    %c0_i32_0 = arith.constant 0 : i32
    %c0_i32_1 = arith.constant 0 : i32
    return %c0_i32, %c0_i32_0 : i32, i32
  }
  func.func @transform_9(%arg0: i32) -> (i32, i32) {
    %c0_i32 = arith.constant 0 : i32
    %c0_i32_0 = arith.constant 0 : i32
    return %arg0, %c0_i32 : i32, i32
  }
}

</mosaic_0001>

<bundles_post_ra>
// kernel: tpu_custom_call.1
= control target key start
LH: loop header
LB: loop body
LE: loop exit
PB: predicated region body
PF: predicated region fallthrough
CT: control target
= control target key end

     0   :  { %s1818_s30 = smov 0   ;;  %s2242_s0 = inlined_call_operand.vmem [shape: f32[256,8], index: 0, kind: input, shape index: {}]   ;;  %s2243_s1 = inlined_call_operand.vmem [shape: bf16[8,128], index: 1, kind: input, shape index: {}]   ;;  %s2244_s2 = inlined_call_operand.vmem [shape: f32[1,128], index: 2, kind: input, shape index: {}]   ;;  %s2245_s3 = inlined_call_operand.vmem [shape: bf16[128,256], index: 3, kind: input, shape index: {}]   ;;  %s2246_s4 = inlined_call_operand.vmem [shape: f32[1,256], index: 4, kind: input, shape index: {}]   ;;  %s2247_s5 = inlined_call_operand.vmem [shape: bf16[256,128], index: 5, kind: input, shape index: {}]   ;;  %s2248_s6 = inlined_call_operand.vmem [shape: f32[1,128], index: 6, kind: input, shape index: {}]   ;;  %s2249_s7 = inlined_call_operand.vmem [shape: bf16[128,8], index: 7, kind: input, shape index: {}]   ;;  %s2250_s8 = inlined_call_operand.vmem [shape: f32[1,8], index: 8, kind: input, shape index: {}]   ;;  %s2251_s9 = inlined_call_operand.vmem [shape: f32[256,8], index: 9, kind: output, shape index: {}]  }
   0x1 LB: > { %s1323_s10 = sadd.s32 4294967295, %s1766_s30   ;;  %p1327_p0 = scmp.ge.s32.totalorder %s1766_s30, 1  ;;  %s1766_s30 = sphi %s1818_s30, %s19_s30  }
   0x2   : > { %p288_p1 = scmp.lt.s32.totalorder %s1766_s30, 5 }
   0x4   : > { %p289_p2 = pnand %p1327_p0, %p288_p1 }
   0x5   : > { %s1328_s13 = sshll.u32 (!%p289_p2), %s1323_s10, 3 }
   0x6   : > { %292 = sbr.rel (%p289_p2) target bundleno = 784 (0x310), region = 56  ;;  %p325_p3 = scmp.lt.s32.totalorder (!%p289_p2), %s1328_s13, 31 }
   0xb   : > { %v343_v0 = vld [vmem:[%s2243_s1] sm:$0xf]  ;;  %vm355_vm0 = vcmask 1043456   ;;  %v1392_v2 = vld [vmem:[%s2245_s3 + $0x70] sm:$0xf]  ;;  %s2253_s13 = smov (!%p325_p3, %s1328_s13), 31 }
   0xc   : > { %v357_v1 = vsel %vm355_vm0, %v343_v0, 0  ;;  %v1673_v3 = vld [vmem:[%s2245_s3 + $0x74] sm:$0xf0]  ;;  %v1672_v5 = vld [vmem:[%s2245_s3 + $0x74] sm:$0xf]  ;;  %s1329_s10 = sshll.u32 %s2253_s13, 3 }
   0xd   : > { %366 = vmatpush.bf16.msra.mxu0 %v357_v1  ;;  %v1393_v4 = vor.u32 %v1673_v3, %v1392_v2  ;;  %v1394_v6 = vld [vmem:[%s2245_s3 + $0x78] sm:$0xf0]  ;;  %v1384_v7 = vld [vmem:[%s2245_s3 + $0x60] sm:$0xf]  ;;  %v1671_v9 = vld [vmem:[%s2245_s3 + $0x64] sm:$0xf0]  ;;  %s1868_s18 = scalar_lea.vmem %s2242_s0, %s1329_s10  ;;  %s2203_s19 = scalar_lea.vmem %s2251_s9, %s1329_s10 }
   0xe   : > { %v1397_v8 = vor.u32 %v1672_v5, %v1394_v6  ;;  %v1670_v10 = vld [vmem:[%s2245_s3 + $0x64] sm:$0xf]  ;;  %v1385_v11 = vor.u32 %v1671_v9, %v1384_v7  ;;  %v1386_v12 = vld [vmem:[%s2245_s3 + $0x68] sm:$0xf0]  ;;  %v1376_v14 = vld [vmem:[%s2245_s3 + $0x50] sm:$0xf] }
   0xf   : > { %486 = vmatpush.bf16.msra.mxu1 %v1393_v4  ;;  %v1389_v13 = vor.u32 %v1670_v10, %v1386_v12  ;;  %v1669_v15 = vld [vmem:[%s2245_s3 + $0x54] sm:$0xf0]  ;;  %v1668_v16 = vld [vmem:[%s2245_s3 + $0x54] sm:$0xf]  ;;  %v1378_v17 = vld [vmem:[%s2245_s3 + $0x58] sm:$0xf0] }
  0x10   : > { %505 = vmatpush.bf16.msra.mxu2 %v1397_v8  ;;  %v337_v18 = vld [vmem:[%s1868_s18] sm:$0xff]  ;;  %v338_v19 = vld [vmem:[%s1868_s18 + $0x8] sm:$0xff]  ;;  %vm348_vm1 = vcmask 64512   ;;  %v1377_v22 = vor.u32 %v1669_v15, %v1376_v14  ;;  %v1381_v25 = vor.u32 %v1668_v16, %v1378_v17  ;;  %v339_v29 = vld [vmem:[%s1868_s18 + $0x10] sm:$0xff] }
  0x11   : > { %v1368_v20 = vld [vmem:[%s2245_s3 + $0x40] sm:$0xf]  ;;  %v341_v21 = vpack.c.bf16 %v338_v19, %v337_v18  ;;  %v1667_v23 = vld [vmem:[%s2245_s3 + $0x44] sm:$0xf0]  ;;  %v1666_v24 = vld [vmem:[%s2245_s3 + $0x44] sm:$0xf] }
  0x12   : > { %v1370_v26 = vld [vmem:[%s2245_s3 + $0x48] sm:$0xf0]  ;;  %v1369_v27 = vor.u32 %v1667_v23, %v1368_v20  ;;  %v340_v30 = vld [vmem:[%s1868_s18 + $0x18] sm:$0xff]  ;;  %v1360_v32 = vld [vmem:[%s2245_s3 + $0x30] sm:$0xf] }
  0x13   : > { %487 = vmatpush.bf16.msra.mxu1 %v1385_v11  ;;  %1332 = vmatmul.msk.bf16.vlgmr.msra.gmra.mxu0 %vm348_vm1, %v341_v21  ;;  %v1373_v28 = vor.u32 %v1666_v24, %v1370_v26  ;;  %v342_v31 = vpack.c.bf16 %v340_v30, %v339_v29  ;;  %v1665_v33 = vld [vmem:[%s2245_s3 + $0x34] sm:$0xf0]  ;;  %v1664_v34 = vld [vmem:[%s2245_s3 + $0x34] sm:$0xf]  ;;  %v1362_v36 = vld [vmem:[%s2245_s3 + $0x38] sm:$0xf0] }
  0x14   : > { %506 = vmatpush.bf16.msra.mxu2 %v1389_v13  ;;  %v1361_v35 = vor.u32 %v1665_v33, %v1360_v32  ;;  %v1365_v37 = vor.u32 %v1664_v34, %v1362_v36  ;;  %v1352_v38 = vld [vmem:[%s2245_s3 + $0x20] sm:$0xf]  ;;  %v1663_v39 = vld [vmem:[%s2245_s3 + $0x24] sm:$0xf0]  ;;  %v1662_v40 = vld [vmem:[%s2245_s3 + $0x24] sm:$0xf] }
  0x15   : > { %v1353_v41 = vor.u32 %v1663_v39, %v1352_v38  ;;  %v1354_v42 = vld [vmem:[%s2245_s3 + $0x28] sm:$0xf0]  ;;  %v1344_v44 = vld [vmem:[%s2245_s3 + $0x10] sm:$0xf]  ;;  %v1661_v45 = vld [vmem:[%s2245_s3 + $0x14] sm:$0xf0] }
  0x16   : > { %v1357_v43 = vor.u32 %v1662_v40, %v1354_v42  ;;  %v1660_v46 = vld [vmem:[%s2245_s3 + $0x14] sm:$0xf]  ;;  %v1345_v47 = vor.u32 %v1661_v45, %v1344_v44  ;;  %v1346_v48 = vld [vmem:[%s2245_s3 + $0x18] sm:$0xf0]  ;;  %v1336_v50 = vld [vmem:[%s2245_s3] sm:$0xf] }
  0x17   : > { %488 = vmatpush.bf16.msra.mxu1 %v1377_v22  ;;  %v1349_v49 = vor.u32 %v1660_v46, %v1346_v48  ;;  %v1659_v51 = vld [vmem:[%s2245_s3 + $0x4] sm:$0xf0]  ;;  %v1658_v52 = vld [vmem:[%s2245_s3 + $0x4] sm:$0xf]  ;;  %v1338_v54 = vld [vmem:[%s2245_s3 + $0x8] sm:$0xf0] }
  0x18   : > { %507 = vmatpush.bf16.msra.mxu2 %v1381_v25  ;;  %v1337_v53 = vor.u32 %v1659_v51, %v1336_v50  ;;  %v1341_v55 = vor.u32 %v1658_v52, %v1338_v54  ;;  %v809_v56 = vld [vmem:[%s2243_s1] sm:$0xf]  ;;  %v1681_v9 = vld [vmem:[%s2247_s5 + $0x38] sm:$0xff]  ;;  %v1680_v11 = vld [vmem:[%s2247_s5 + $0x30] sm:$0xff] }
  0x19   : > { %v821_v57 = vsel %vm355_vm0, %v809_v56, 0  ;;  %v1754_v59 = vld [vmem:[%s2244_s2] ss:$0 sm:$0xff]  ;;  %v1689_v10 = vld [vmem:[%s2247_s5 + $0x78] sm:$0xff]  ;;  %668 = vmatpush.bf16.msra.mxu3 %v1681_v9  ;;  %v1688_v12 = vld [vmem:[%s2247_s5 + $0x70] sm:$0xff] }
  0x1a   : > { %687 = vmatpush.bf16.msrb.mxu0 %v1689_v10  ;;  %v1679_v13 = vld [vmem:[%s2247_s5 + $0x28] sm:$0xff]  ;;  %v803_v15 = vld [vmem:[%s1868_s18 + $0x20] sm:$0xff]  ;;  %v805_v19 = vld [vmem:[%s1868_s18 + $0x30] sm:$0xff] }
  0x1b   : > { %489 = vmatpush.bf16.msra.mxu1 %v1369_v27  ;;  %v1687_v14 = vld [vmem:[%s2247_s5 + $0x68] sm:$0xff]  ;;  %v1678_v17 = vld [vmem:[%s2247_s5 + $0x20] sm:$0xff]  ;;  %v806_v20 = vld [vmem:[%s1868_s18 + $0x38] sm:$0xff] }
  0x1c   : > { %508 = vmatpush.bf16.msra.mxu2 %v1373_v28  ;;  %v804_v16 = vld [vmem:[%s1868_s18 + $0x28] sm:$0xff]  ;;  %v808_v21 = vpack.c.bf16 %v806_v20, %v805_v19  ;;  %v1677_v22 = vld [vmem:[%s2247_s5 + $0x18] sm:$0xff]  ;;  %v1686_v23 = vld [vmem:[%s2247_s5 + $0x60] sm:$0xff] }
  0x1d   : > { %669 = vmatpush.bf16.msra.mxu3 %v1680_v11  ;;  %v807_v18 = vpack.c.bf16 %v804_v16, %v803_v15  ;;  %v1676_v24 = vld [vmem:[%s2247_s5 + $0x10] sm:$0xff]  ;;  %v1685_v25 = vld [vmem:[%s2247_s5 + $0x58] sm:$0xff]  ;;  %v1675_v26 = vld [vmem:[%s2247_s5 + $0x8] sm:$0xff] }
  0x1e   : > { %688 = vmatpush.bf16.msrb.mxu0 %v1688_v12  ;;  %v1684_v27 = vld [vmem:[%s2247_s5 + $0x50] sm:$0xff]  ;;  %v1674_v28 = vld [vmem:[%s2247_s5] sm:$0xff]  ;;  %v1683_v29 = vld [vmem:[%s2247_s5 + $0x48] sm:$0xff] }
  0x1f   : > { %490 = vmatpush.bf16.msra.mxu1 %v1361_v35  ;;  %v1682_v30 = vld [vmem:[%s2247_s5 + $0x40] sm:$0xff]  ;;  %v1713_v32 = vld [vmem:[%s2245_s3 + $0x74] sm:$0xf0]  ;;  %v1712_v33 = vld [vmem:[%s2245_s3 + $0x74] sm:$0xf] }
  0x20   : > { %509 = vmatpush.bf16.msra.mxu2 %v1365_v37  ;;  %v1556_v35 = vld [vmem:[%s2245_s3 + $0x78] sm:$0xf0]  ;;  %v1546_v37 = vld [vmem:[%s2245_s3 + $0x60] sm:$0xf]  ;;  %v1711_v38 = vld [vmem:[%s2245_s3 + $0x64] sm:$0xf0] }
  0x21   : > { %670 = vmatpush.bf16.msra.mxu3 %v1679_v13  ;;  %v1559_v36 = vor.u32 %v1712_v33, %v1556_v35  ;;  %v1710_v39 = vld [vmem:[%s2245_s3 + $0x64] sm:$0xf]  ;;  %v1547_v40 = vor.u32 %v1711_v38, %v1546_v37  ;;  %v1709_v44 = vld [vmem:[%s2245_s3 + $0x54] sm:$0xf0]  ;;  %v1708_v45 = vld [vmem:[%s2245_s3 + $0x54] sm:$0xf] }
  0x22   : > { %689 = vmatpush.bf16.msrb.mxu0 %v1687_v14  ;;  %v1707_v50 = vld [vmem:[%s2245_s3 + $0x44] sm:$0xf0]  ;;  %v1706_v51 = vld [vmem:[%s2245_s3 + $0x44] sm:$0xf]  ;;  %v400_v52 = vld [vmem:[%s2246_s4] sm:$0x3] }
  0x23   : > { %1333 = vmatmul.msk.bf16.gmra.mxu0 %vm348_vm1, %v342_v31  ;;  %491 = vmatpush.bf16.msra.mxu1 %v1353_v41  ;;  %v1554_v31 = vld [vmem:[%s2245_s3 + $0x70] sm:$0xf]  ;;  %v1548_v41 = vld [vmem:[%s2245_s3 + $0x68] sm:$0xf0]  ;;  %v1701_v12 = vld [vmem:[%s2245_s3 + $0x14] sm:$0xf0] }
  0x24   : > { %510 = vmatpush.bf16.msra.mxu2 %v1357_v43  ;;  %v1555_v34 = vor.u32 %v1713_v32, %v1554_v31  ;;  %v1551_v42 = vor.u32 %v1710_v39, %v1548_v41  ;;  %v1538_v43 = vld [vmem:[%s2245_s3 + $0x50] sm:$0xf]  ;;  %v1700_v16 = vld [vmem:[%s2245_s3 + $0x14] sm:$0xf] }
  0x25   : > { %671 = vmatpush.bf16.msra.mxu3 %v1678_v17  ;;  %v1539_v46 = vor.u32 %v1709_v44, %v1538_v43  ;;  %v1506_v11 = vld [vmem:[%s2245_s3 + $0x10] sm:$0xf]  ;;  %v1508_v17 = vld [vmem:[%s2245_s3 + $0x18] sm:$0xf0] }
  0x26   : > { %690 = vmatpush.bf16.msrb.mxu0 %v1686_v23  ;;  %v1507_v13 = vor.u32 %v1701_v12, %v1506_v11  ;;  %v1498_v23 = vld [vmem:[%s2245_s3] sm:$0xf]  ;;  %v1719_v11 = vld [vmem:[%s2247_s5 + $0x28] sm:$0xff]  ;;  %v1725_v12 = vld [vmem:[%s2247_s5 + $0x58] sm:$0xff] }
  0x27   : > { %492 = vmatpush.bf16.msra.mxu1 %v1345_v47  ;;  %v1540_v47 = vld [vmem:[%s2245_s3 + $0x58] sm:$0xf0] }
  0x28   : > { %511 = vmatpush.bf16.msra.mxu2 %v1349_v49  ;;  %v1543_v48 = vor.u32 %v1708_v45, %v1540_v47  ;;  %v1530_v49 = vld [vmem:[%s2245_s3 + $0x40] sm:$0xf] }
  0x29   : > { %672 = vmatpush.bf16.msra.mxu3 %v1677_v22  ;;  %v1531_v54 = vor.u32 %v1707_v50, %v1530_v49  ;;  %v1755_v49 = vld [vmem:[%s2244_s2] ss:$0 sm:$0xff]  ;;  %v1695_v50 = vld [vmem:[%s2249_s7 + $0x28] sm:$0xff] }
  0x2a   : > { %691 = vmatpush.bf16.msrb.mxu0 %v1685_v25  ;;  %v1698_v25 = vld [vmem:[%s2245_s3 + $0x4] sm:$0xf] }
  0x2b   : > { %493 = vmatpush.bf16.msra.mxu1 %v1337_v53 }
  0x2c   : > { %512 = vmatpush.bf16.msra.mxu2 %v1341_v55  ;;  %v1532_v55 = vld [vmem:[%s2245_s3 + $0x48] sm:$0xf0] }
  0x2d   : > { %673 = vmatpush.bf16.msra.mxu3 %v1676_v24  ;;  %v1535_v56 = vor.u32 %v1706_v51, %v1532_v55  ;;  %v1699_v24 = vld [vmem:[%s2245_s3 + $0x4] sm:$0xf0] }
  0x2e   : > { %692 = vmatpush.bf16.msrb.mxu0 %v1684_v27  ;;  %v1499_v27 = vor.u32 %v1699_v24, %v1498_v23  ;;  %v1716_v23 = vld [vmem:[%s2247_s5 + $0x10] sm:$0xff] }
  0x30   : > { %830 = vmatpush.bf16.msrb.mxu2 %v821_v57  ;;  %v402_v57 = vperm.slane %v400_v52, 0 }
  0x31   : > { %674 = vmatpush.bf16.msra.mxu3 %v1675_v26 }
  0x32   : > { %693 = vmatpush.bf16.msrb.mxu0 %v1683_v29 }
  0x35   : > { %675 = vmatpush.bf16.msra.mxu3 %v1674_v28  ;;  %v1500_v28 = vld [vmem:[%s2245_s3 + $0x8] sm:$0xf0] }
  0x36   : > { %694 = vmatpush.bf16.msrb.mxu0 %v1682_v30  ;;  %v1503_v31 = vor.u32 %v1698_v25, %v1500_v28  ;;  %v1715_v28 = vld [vmem:[%s2247_s5 + $0x8] sm:$0xff] }
  0x39   : > { %950 = vmatpush.bf16.msrb.mxu3 %v1555_v34 }
  0x3a   : > { %969 = vmatpush.bf16.msra.mxu0 %v1559_v36 }
  0x3d   : > { %951 = vmatpush.bf16.msrb.mxu3 %v1547_v40 }
  0x3e   : > { %970 = vmatpush.bf16.msra.mxu0 %v1551_v42 }
  0x41   : > { %952 = vmatpush.bf16.msrb.mxu3 %v1539_v46  ;;  %v1697_v46 = vld [vmem:[%s2249_s7 + $0x38] sm:$0xff] }
  0x42   : > { %971 = vmatpush.bf16.msra.mxu0 %v1543_v48  ;;  %780 = vmatpush.bf16.msrb.mxu1 %v1697_v46  ;;  %v1696_v48 = vld [vmem:[%s2249_s7 + $0x30] sm:$0xff] }
  0x45   : > { %953 = vmatpush.bf16.msrb.mxu3 %v1531_v54  ;;  %v1694_v54 = vld [vmem:[%s2249_s7 + $0x20] sm:$0xff] }
  0x46   : > { %972 = vmatpush.bf16.msra.mxu0 %v1535_v56  ;;  %781 = vmatpush.bf16.msrb.mxu1 %v1696_v48 }
  0x4a   : > { %782 = vmatpush.bf16.msrb.mxu1 %v1695_v50 }
  0x4e   : > { %783 = vmatpush.bf16.msrb.mxu1 %v1694_v54 }
  0x90   : > { %v368_v58 = vpop.f32.mrf.mxu0 }
  0x91   : > { %v369_v60 = vadd.f32 %v1754_v59, %v368_v58  ;;  %v1522_v58 = vld [vmem:[%s2245_s3 + $0x30] sm:$0xf] }
  0x93   : > { %v378_v63 = vmax.f32 %v369_v60, 0.0 }
  0x98   : > { %v370_v61 = vpop.f32.mrf.mxu0 }
  0x99   : > { %v371_v62 = vadd.f32 %v1754_v59, %v370_v61  ;;  %v1704_v61 = vld [vmem:[%s2245_s3 + $0x34] sm:$0xf] }
  0x9b   : > { %v379_v0 = vmax.f32 %v371_v62, 0.0  ;;  %v1524_v62 = vld [vmem:[%s2245_s3 + $0x38] sm:$0xf0] }
  0x9d   : > { %v382_v1 = vpack.c.bf16 %v379_v0, %v378_v63  ;;  %v1527_v63 = vor.u32 %v1704_v61, %v1524_v62 }
  0x9f   : > { %494 = vmatmul.bf16.vlgmr.msra.gmra.mxu1 %v382_v1  ;;  %513 = vmatmul.bf16.vlgmr.msra.gmra.mxu2 %v382_v1 }
  0xa0   : > { %v373_v2 = vpop.f32.mrf.mxu0  ;;  %973 = vmatpush.bf16.msra.mxu0 %v1527_v63 }
  0xa1   : > { %v374_v3 = vadd.f32 %v1754_v59, %v373_v2  ;;  %v1514_v2 = vld [vmem:[%s2245_s3 + $0x20] sm:$0xf] }
  0xa3   : > { %v380_v6 = vmax.f32 %v374_v3, 0.0  ;;  %v1703_v3 = vld [vmem:[%s2245_s3 + $0x24] sm:$0xf0] }
  0xa8   : > { %v375_v4 = vpop.f32.mrf.mxu0 }
  0xa9   : > { %v376_v5 = vadd.f32 %v1754_v59, %v375_v4  ;;  %v1705_v59 = vld [vmem:[%s2245_s3 + $0x34] sm:$0xf0]  ;;  %v1702_v4 = vld [vmem:[%s2245_s3 + $0x24] sm:$0xf] }
  0xaa   : > { %v1523_v60 = vor.u32 %v1705_v59, %v1522_v58 }
  0xab   : > { %v381_v7 = vmax.f32 %v376_v5, 0.0 }
  0xac   : > { %954 = vmatpush.bf16.msrb.mxu3 %v1523_v60 }
  0xad   : > { %v383_v8 = vpack.c.bf16 %v381_v7, %v380_v6  ;;  %v1515_v6 = vor.u32 %v1703_v3, %v1514_v2  ;;  %v1516_v7 = vld [vmem:[%s2245_s3 + $0x28] sm:$0xf0]  ;;  %v1692_v2 = vld [vmem:[%s2249_s7 + $0x10] sm:$0xff] }
  0xae   : > { %v1519_v10 = vor.u32 %v1702_v4, %v1516_v7  ;;  %v1691_v3 = vld [vmem:[%s2249_s7 + $0x8] sm:$0xff]  ;;  %v1690_v4 = vld [vmem:[%s2249_s7] sm:$0xff]  ;;  %v1721_v7 = vld [vmem:[%s2247_s5 + $0x38] sm:$0xff] }
  0xaf   : > { %499 = vmatmul.bf16.gmra.mxu1 %v383_v8  ;;  %518 = vmatmul.bf16.gmra.mxu2 %v383_v8  ;;  %v403_v8 = vperm.slane %v400_v52, 1 }
  0xb0   : > { %955 = vmatpush.bf16.msrb.mxu3 %v1515_v6  ;;  %974 = vmatpush.bf16.msra.mxu0 %v1519_v10  ;;  %v1728_v6 = vld [vmem:[%s2247_s5 + $0x70] sm:$0xff]  ;;  %v1726_v10 = vld [vmem:[%s2247_s5 + $0x60] sm:$0xff] }
  0xb4   : > { %956 = vmatpush.bf16.msrb.mxu3 %v1507_v13 }
  0xb8   : > { %957 = vmatpush.bf16.msrb.mxu3 %v1499_v27 }
  0xbf   : > { %1494 = vmatmul.msk.bf16.vlgmr.msrb.gmra.mxu2 %vm348_vm1, %v807_v18  ;;  %v1511_v18 = vor.u32 %v1700_v16, %v1508_v17  ;;  %v1756_v16 = vld [vmem:[%s2248_s6] ss:$0 sm:$0xff]  ;;  %v1724_v17 = vld [vmem:[%s2247_s5 + $0x50] sm:$0xff] }
  0xc1   : > { %975 = vmatpush.bf16.msra.mxu0 %v1511_v18  ;;  %v1717_v18 = vld [vmem:[%s2247_s5 + $0x18] sm:$0xff] }
  0xc5   : > { %976 = vmatpush.bf16.msra.mxu0 %v1503_v31 }
  0xcf   : > { %1495 = vmatmul.msk.bf16.gmra.mxu2 %vm348_vm1, %v808_v21 }
 0x11c   : > { %v495_v53 = vpop.f32.mrf.mxu1 }
 0x11d   : > { %v496_v1 = vadd.f32 %v495_v53, %v402_v57 }
 0x11f   : > { %v524_v14 = vmax.f32 %v496_v1, 0.0  ;;  %v1693_v1 = vld [vmem:[%s2249_s7 + $0x18] sm:$0xff] }
 0x120   : > { %784 = vmatpush.bf16.msrb.mxu1 %v1693_v1 }
 0x122   : > { %v514_v0 = vpop.f32.mrf.mxu2 }
 0x123   : > { %v515_v19 = vadd.f32 %v514_v0, %v403_v8 }
 0x124   : > { %v497_v5 = vpop.f32.mrf.mxu1  ;;  %785 = vmatpush.bf16.msrb.mxu1 %v1692_v2 }
 0x125   : > { %v498_v9 = vadd.f32 %v497_v5, %v402_v57  ;;  %v525_v29 = vmax.f32 %v515_v19, 0.0  ;;  %v1729_v5 = vld [vmem:[%s2247_s5 + $0x78] sm:$0xff] }
 0x126   : > { %1151 = vmatpush.bf16.msra.mxu2 %v1729_v5 }
 0x127   : > { %v526_v15 = vmax.f32 %v498_v9, 0.0  ;;  %v1720_v9 = vld [vmem:[%s2247_s5 + $0x30] sm:$0xff] }
 0x128   : > { %786 = vmatpush.bf16.msrb.mxu1 %v1691_v3 }
 0x129   : > { %v532_v20 = vpack.c.bf16 %v526_v15, %v524_v14  ;;  %v1718_v15 = vld [vmem:[%s2247_s5 + $0x20] sm:$0xff] }
 0x12a   : > { %v516_v21 = vpop.f32.mrf.mxu2  ;;  %1152 = vmatpush.bf16.msra.mxu2 %v1728_v6 }
 0x12b   : > { %v517_v22 = vadd.f32 %v516_v21, %v403_v8  ;;  %676 = vmatmul.bf16.vlgmr.msra.gmra.mxu3 %v532_v20  ;;  %v1723_v20 = vld [vmem:[%s2247_s5 + $0x48] sm:$0xff] }
 0x12c   : > { %v500_v26 = vpop.f32.mrf.mxu1  ;;  %787 = vmatpush.bf16.msrb.mxu1 %v1690_v4 }
 0x12d   : > { %v527_v30 = vmax.f32 %v517_v22, 0.0  ;;  %v501_v34 = vadd.f32 %v500_v26, %v402_v57  ;;  %v1722_v26 = vld [vmem:[%s2247_s5 + $0x40] sm:$0xff] }
 0x12f   : > { %v533_v32 = vpack.c.bf16 %v527_v30, %v525_v29  ;;  %v528_v37 = vmax.f32 %v501_v34, 0.0  ;;  %v1714_v34 = vld [vmem:[%s2247_s5] sm:$0xff] }
 0x130   : > { %1738 = vmatpush.bf16.msra.mxu1 %v1721_v7 }
 0x131   : > { %695 = vmatmul.bf16.vlgmr.msrb.gmra.mxu0 %v533_v32 }
 0x132   : > { %v519_v33 = vpop.f32.mrf.mxu2  ;;  %1132 = vmatpush.bf16.msrb.mxu0 %v1721_v7 }
 0x133   : > { %v520_v39 = vadd.f32 %v519_v33, %v403_v8 }
 0x134   : > { %v502_v35 = vpop.f32.mrf.mxu1  ;;  %1739 = vmatpush.bf16.msra.mxu1 %v1720_v9 }
 0x135   : > { %v503_v36 = vadd.f32 %v502_v35, %v402_v57  ;;  %v529_v43 = vmax.f32 %v520_v39, 0.0 }
 0x136   : > { %1133 = vmatpush.bf16.msrb.mxu0 %v1720_v9 }
 0x137   : > { %v530_v38 = vmax.f32 %v503_v36, 0.0 }
 0x138   : > { %1740 = vmatpush.bf16.msra.mxu1 %v1719_v11 }
 0x139   : > { %v534_v40 = vpack.c.bf16 %v530_v38, %v528_v37 }
 0x13a   : > { %v521_v41 = vpop.f32.mrf.mxu2  ;;  %1134 = vmatpush.bf16.msrb.mxu0 %v1719_v11  ;;  %v1737_v11 = vld [vmem:[%s2249_s7 + $0x38] sm:$0xff] }
 0x13b   : > { %v522_v42 = vadd.f32 %v521_v41, %v403_v8  ;;  %681 = vmatmul.bf16.gmra.mxu3 %v534_v40  ;;  %v1727_v8 = vld [vmem:[%s2247_s5 + $0x68] sm:$0xff] }
 0x13c   : > { %1153 = vmatpush.bf16.msra.mxu2 %v1727_v8  ;;  %1741 = vmatpush.bf16.msra.mxu1 %v1718_v15 }
 0x13d   : > { %v531_v44 = vmax.f32 %v522_v42, 0.0  ;;  %1244 = vmatpush.bf16.msra.mxu3 %v1737_v11 }
 0x13e   : > { %1135 = vmatpush.bf16.msrb.mxu0 %v1718_v15  ;;  %v1734_v15 = vld [vmem:[%s2249_s7 + $0x20] sm:$0xff] }
 0x13f   : > { %v535_v45 = vpack.c.bf16 %v531_v44, %v529_v43  ;;  %v864_v44 = vld [vmem:[%s2246_s4] sm:$0x3] }
 0x140   : > { %1154 = vmatpush.bf16.msra.mxu2 %v1726_v10  ;;  %1742 = vmatpush.bf16.msra.mxu1 %v1717_v18  ;;  %v867_v46 = vperm.slane %v864_v44, 1  ;;  %v866_v50 = vperm.slane %v864_v44, 0 }
 0x141   : > { %700 = vmatmul.bf16.gmra.mxu0 %v535_v45 }
 0x142   : > { %v832_v47 = vpop.f32.mrf.mxu2  ;;  %1136 = vmatpush.bf16.msrb.mxu0 %v1717_v18  ;;  %v1733_v18 = vld [vmem:[%s2249_s7 + $0x18] sm:$0xff] }
 0x143   : > { %v833_v51 = vadd.f32 %v1755_v49, %v832_v47 }
 0x144   : > { %1155 = vmatpush.bf16.msra.mxu2 %v1725_v12  ;;  %1743 = vmatpush.bf16.msra.mxu1 %v1716_v23  ;;  %v1736_v12 = vld [vmem:[%s2249_s7 + $0x30] sm:$0xff] }
 0x145   : > { %v842_v55 = vmax.f32 %v833_v51, 0.0  ;;  %1245 = vmatpush.bf16.msra.mxu3 %v1736_v12 }
 0x146   : > { %1137 = vmatpush.bf16.msrb.mxu0 %v1716_v23 }
 0x148   : > { %1156 = vmatpush.bf16.msra.mxu2 %v1724_v17  ;;  %1744 = vmatpush.bf16.msra.mxu1 %v1715_v28 }
 0x14a   : > { %v834_v52 = vpop.f32.mrf.mxu2  ;;  %1138 = vmatpush.bf16.msrb.mxu0 %v1715_v28 }
 0x14b   : > { %v835_v53 = vadd.f32 %v1755_v49, %v834_v52 }
 0x14c   : > { %1157 = vmatpush.bf16.msra.mxu2 %v1723_v20  ;;  %1745 = vmatpush.bf16.msra.mxu1 %v1714_v34  ;;  %v1732_v20 = vld [vmem:[%s2249_s7 + $0x10] sm:$0xff] }
 0x14d   : > { %v843_v56 = vmax.f32 %v835_v53, 0.0 }
 0x14e   : > { %1139 = vmatpush.bf16.msrb.mxu0 %v1714_v34 }
 0x14f   : > { %v846_v57 = vpack.c.bf16 %v843_v56, %v842_v55 }
 0x150   : > { %1158 = vmatpush.bf16.msra.mxu2 %v1722_v26 }
 0x151   : > { %958 = vmatmul.bf16.vlgmr.msrb.gmra.mxu3 %v846_v57  ;;  %977 = vmatmul.bf16.vlgmr.msra.gmra.mxu0 %v846_v57 }
 0x152   : > { %v837_v58 = vpop.f32.mrf.mxu2 }
 0x153   : > { %v838_v59 = vadd.f32 %v1755_v49, %v837_v58 }
 0x155   : > { %v844_v62 = vmax.f32 %v838_v59, 0.0 }
 0x15a   : > { %v839_v60 = vpop.f32.mrf.mxu2 }
 0x15b   : > { %v840_v61 = vadd.f32 %v1755_v49, %v839_v60 }
 0x15d   : > { %v845_v63 = vmax.f32 %v840_v61, 0.0 }
 0x15f   : > { %v847_v0 = vpack.c.bf16 %v845_v63, %v844_v62 }
 0x161   : > { %963 = vmatmul.bf16.gmra.mxu3 %v847_v0  ;;  %982 = vmatmul.bf16.gmra.mxu0 %v847_v0 }
 0x1ae   : > { %v677_v13 = vpop.f32.mrf.mxu3  ;;  %v696_v14 = vpop.f32.mrf.mxu0 }
 0x1af   : > { %v678_v19 = vadd.f32 %v1756_v16, %v677_v13  ;;  %v1735_v13 = vld [vmem:[%s2249_s7 + $0x28] sm:$0xff] }
 0x1b0   : > { %1246 = vmatpush.bf16.msra.mxu3 %v1735_v13 }
 0x1b1   : > { %v697_v24 = vadd.f32 %v696_v14, %v678_v19  ;;  %v1757_v14 = vld [vmem:[%s2250_s8] ss:$0 sm:$0xff] }
 0x1b3   : > { %v706_v29 = vmax.f32 %v697_v24, 0.0  ;;  %v1730_v24 = vld [vmem:[%s2249_s7] sm:$0xff] }
 0x1b4   : > { %1247 = vmatpush.bf16.msra.mxu3 %v1734_v15 }
 0x1b6   : > { %v679_v21 = vpop.f32.mrf.mxu3  ;;  %v698_v22 = vpop.f32.mrf.mxu0 }
 0x1b7   : > { %v680_v25 = vadd.f32 %v1756_v16, %v679_v21 }
 0x1b8   : > { %1248 = vmatpush.bf16.msra.mxu3 %v1733_v18 }
 0x1b9   : > { %v699_v27 = vadd.f32 %v698_v22, %v680_v25  ;;  %v1731_v22 = vld [vmem:[%s2249_s7 + $0x8] sm:$0xff] }
 0x1bb   : > { %v707_v30 = vmax.f32 %v699_v27, 0.0 }
 0x1bc   : > { %1249 = vmatpush.bf16.msra.mxu3 %v1732_v20 }
 0x1bd   : > { %v710_v31 = vpack.c.bf16 %v707_v30, %v706_v29  ;;  %v1758_v30 = vld [vmem:[%s2248_s6] ss:$0 sm:$0xff] }
 0x1be   : > { %v682_v32 = vpop.f32.mrf.mxu3  ;;  %v701_v33 = vpop.f32.mrf.mxu0 }
 0x1bf   : > { %788 = vmatmul.bf16.vlgmr.msrb.gmra.mxu1 %v710_v31  ;;  %v683_v35 = vadd.f32 %v1756_v16, %v682_v32 }
 0x1c0   : > { %1250 = vmatpush.bf16.msra.mxu3 %v1731_v22 }
 0x1c1   : > { %v702_v38 = vadd.f32 %v701_v33, %v683_v35 }
 0x1c3   : > { %v708_v41 = vmax.f32 %v702_v38, 0.0 }
 0x1c4   : > { %1251 = vmatpush.bf16.msra.mxu3 %v1730_v24 }
 0x1c6   : > { %v684_v36 = vpop.f32.mrf.mxu3  ;;  %v703_v37 = vpop.f32.mrf.mxu0 }
 0x1c7   : > { %v685_v39 = vadd.f32 %v1756_v16, %v684_v36 }
 0x1c9   : > { %v704_v40 = vadd.f32 %v703_v37, %v685_v39 }
 0x1cb   : > { %v709_v42 = vmax.f32 %v704_v40, 0.0 }
 0x1cd   : > { %v711_v43 = vpack.c.bf16 %v709_v42, %v708_v41 }
 0x1ce   : > { %v978_v45 = vpop.f32.mrf.mxu0 }
 0x1cf   : > { %793 = vmatmul.bf16.gmra.mxu1 %v711_v43  ;;  %v979_v48 = vadd.f32 %v978_v45, %v867_v46 }
 0x1d1   : > { %v989_v52 = vmax.f32 %v979_v48, 0.0 }
 0x1d4   : > { %v959_v47 = vpop.f32.mrf.mxu3 }
 0x1d5   : > { %v960_v54 = vadd.f32 %v959_v47, %v866_v50 }
 0x1d6   : > { %v980_v49 = vpop.f32.mrf.mxu0 }
 0x1d7   : > { %v981_v51 = vadd.f32 %v980_v49, %v867_v46  ;;  %v988_v59 = vmax.f32 %v960_v54, 0.0 }
 0x1d9   : > { %v991_v53 = vmax.f32 %v981_v51, 0.0  ;;  %v1759_v51 = vld [vmem:[%s2250_s8] ss:$0 sm:$0xff] }
 0x1db   : > { %v997_v55 = vpack.c.bf16 %v991_v53, %v989_v52 }
 0x1dc   : > { %v961_v56 = vpop.f32.mrf.mxu3 }
 0x1dd   : > { %v962_v57 = vadd.f32 %v961_v56, %v866_v50  ;;  %1159 = vmatmul.bf16.vlgmr.msra.gmra.mxu2 %v997_v55 }
 0x1de   : > { %v983_v58 = vpop.f32.mrf.mxu0 }
 0x1df   : > { %v990_v60 = vmax.f32 %v962_v57, 0.0  ;;  %v984_v63 = vadd.f32 %v983_v58, %v867_v46 }
 0x1e1   : > { %v996_v61 = vpack.c.bf16 %v990_v60, %v988_v59  ;;  %v993_v2 = vmax.f32 %v984_v63, 0.0 }
 0x1e3   : > { %1140 = vmatmul.bf16.vlgmr.msrb.gmra.mxu0 %v996_v61 }
 0x1e4   : > { %v964_v62 = vpop.f32.mrf.mxu3 }
 0x1e5   : > { %v965_v4 = vadd.f32 %v964_v62, %v866_v50 }
 0x1e6   : > { %v985_v0 = vpop.f32.mrf.mxu0 }
 0x1e7   : > { %v986_v1 = vadd.f32 %v985_v0, %v867_v46  ;;  %v992_v8 = vmax.f32 %v965_v4, 0.0 }
 0x1e9   : > { %v995_v3 = vmax.f32 %v986_v1, 0.0 }
 0x1eb   : > { %v999_v5 = vpack.c.bf16 %v995_v3, %v993_v2 }
 0x1ec   : > { %v966_v6 = vpop.f32.mrf.mxu3 }
 0x1ed   : > { %v967_v7 = vadd.f32 %v966_v6, %v866_v50  ;;  %1164 = vmatmul.bf16.gmra.mxu2 %v999_v5 }
 0x1ef   : > { %v994_v9 = vmax.f32 %v967_v7, 0.0 }
 0x1f1   : > { %v998_v10 = vpack.c.bf16 %v994_v9, %v992_v8 }
 0x1f3   : > { %1145 = vmatmul.bf16.vlgmr.msra.gmra.mxu1 %v998_v10 }
 0x23c   : > { %v789_v16 = vpop.f32.mrf.mxu1 }
 0x23d   : > { %v790_v17 = vadd.f32 %v1757_v14, %v789_v16 }
 0x23f   : > { %799 = vst.msk [vmem:[%s2203_s19] sm:$0xff] %vm348_vm1, %v790_v17 }
 0x244   : > { %v791_v19 = vpop.f32.mrf.mxu1 }
 0x245   : > { %v792_v21 = vadd.f32 %v1757_v14, %v791_v19 }
 0x247   : > { %800 = vst.msk [vmem:[%s2203_s19 + $0x8] sm:$0xff] %vm348_vm1, %v792_v21 }
 0x24c   : > { %v794_v23 = vpop.f32.mrf.mxu1 }
 0x24d   : > { %v795_v25 = vadd.f32 %v1757_v14, %v794_v23 }
 0x24f   : > { %801 = vst.msk [vmem:[%s2203_s19 + $0x10] sm:$0xff] %vm348_vm1, %v795_v25 }
 0x254   : > { %v796_v26 = vpop.f32.mrf.mxu1 }
 0x255   : > { %v797_v27 = vadd.f32 %v1757_v14, %v796_v26 }
 0x257   : > { %802 = vst.msk [vmem:[%s2203_s19 + $0x18] sm:$0xff] %vm348_vm1, %v797_v27 }
 0x260   : > { %v1141_v28 = vpop.f32.mrf.mxu0  ;;  %v1160_v29 = vpop.f32.mrf.mxu2 }
 0x261   : > { %v1142_v31 = vadd.f32 %v1758_v30, %v1141_v28 }
 0x263   : > { %v1161_v34 = vadd.f32 %v1160_v29, %v1142_v31 }
 0x265   : > { %v1170_v37 = vmax.f32 %v1161_v34, 0.0 }
 0x268   : > { %v1143_v32 = vpop.f32.mrf.mxu0  ;;  %v1162_v33 = vpop.f32.mrf.mxu2 }
 0x269   : > { %v1144_v35 = vadd.f32 %v1758_v30, %v1143_v32 }
 0x26b   : > { %v1163_v36 = vadd.f32 %v1162_v33, %v1144_v35 }
 0x26d   : > { %v1171_v38 = vmax.f32 %v1163_v36, 0.0 }
 0x26f   : > { %v1174_v39 = vpack.c.bf16 %v1171_v38, %v1170_v37 }
 0x270   : > { %v1146_v40 = vpop.f32.mrf.mxu1  ;;  %v1165_v41 = vpop.f32.mrf.mxu2 }
 0x271   : > { %1252 = vmatmul.bf16.vlgmr.msra.gmra.mxu3 %v1174_v39  ;;  %v1147_v42 = vadd.f32 %v1758_v30, %v1146_v40 }
 0x273   : > { %v1166_v44 = vadd.f32 %v1165_v41, %v1147_v42 }
 0x275   : > { %v1172_v48 = vmax.f32 %v1166_v44, 0.0 }
 0x278   : > { %v1148_v43 = vpop.f32.mrf.mxu1  ;;  %v1167_v46 = vpop.f32.mrf.mxu2 }
 0x279   : > { %v1149_v45 = vadd.f32 %v1758_v30, %v1148_v43 }
 0x27b   : > { %v1168_v47 = vadd.f32 %v1167_v46, %v1149_v45 }
 0x27d   : > { %v1173_v49 = vmax.f32 %v1168_v47, 0.0 }
 0x27f   : > { %v1175_v50 = vpack.c.bf16 %v1173_v49, %v1172_v48 }
 0x281   : > { %1257 = vmatmul.bf16.gmra.mxu3 %v1175_v50 }
 0x2f4   : > { %v1253_v52 = vpop.f32.mrf.mxu3 }
 0x2f5   : > { %v1254_v53 = vadd.f32 %v1759_v51, %v1253_v52 }
 0x2f7   : > { %1263 = vst.msk [vmem:[%s2203_s19 + $0x20] sm:$0xff] %vm348_vm1, %v1254_v53 }
 0x2fc   : > { %v1255_v54 = vpop.f32.mrf.mxu3 }
 0x2fd   : > { %v1256_v55 = vadd.f32 %v1759_v51, %v1255_v54 }
 0x2ff   : > { %1264 = vst.msk [vmem:[%s2203_s19 + $0x28] sm:$0xff] %vm348_vm1, %v1256_v55 }
 0x304   : > { %v1258_v56 = vpop.f32.mrf.mxu3 }
 0x305   : > { %v1259_v57 = vadd.f32 %v1759_v51, %v1258_v56 }
 0x307   : > { %1265 = vst.msk [vmem:[%s2203_s19 + $0x30] sm:$0xff] %vm348_vm1, %v1259_v57 }
 0x30c   : > { %v1260_v58 = vpop.f32.mrf.mxu3 }
 0x30d   : > { %v1261_v59 = vadd.f32 %v1759_v51, %v1260_v58 }
 0x30f   : > { %1266 = vst.msk [vmem:[%s2203_s19 + $0x38] sm:$0xff] %vm348_vm1, %v1261_v59 }
 0x310 PF: > { %s19_s30 = sadd.s32 1, %s1766_s30  }
 0x311   : > { %p16_p4 = scmp.ge.s32.totalorder %s19_s30, 6  }
 0x313   :  { %18 = sbr.rel (!%p16_p4) target bundleno = 1 (0x1), region = 86 }

</bundles_post_ra>
